<compile_context>
chip_gen: v5e
topology: v5e:2x2
jax: 0.10.0
libtpu: 0.0.40
codegen_flags: <defaults>
</compile_context>

<pallas_src>
import jax
import jax.numpy as jnp
from jax.experimental import pallas as pl
from jax.experimental.pallas import tpu as pltpu


def _siamese_kernel(x1_ref, x2_ref, x3_ref, w1_ref, b1_ref, vt_ref, vb_ref,
                    bias_ref, out_ref):
    w1 = w1_ref[...]                      # (P*C, P*n1)   resident in VMEM
    b1 = b1_ref[...]                      # (1,   P*n1)   resident
    vt = vt_ref[...]                      # (P*n1, P)     anchor head (folded)
    vb = vb_ref[...]                      # (P*n1, P)     pos/neg head (folded)
    bias = bias_ref[0]                    # folded scalar bias (SMEM)
    P = vt.shape[1]

    def branch(x_ref, v):
        # .astype matches the .float() in the PyTorch forward (no-op for f32).
        x = x_ref[...].astype(jnp.float32)
        h = jnp.dot(x, w1, preferred_element_type=jnp.float32) + b1
        h = jnp.where(h > 0, h, 0.01 * h)          # LeakyReLU(0.01)
        return jnp.dot(h, v, preferred_element_type=jnp.float32)

    anchor = branch(x1_ref, vt)           # (tm, P) -- shared by both heads
    pos = branch(x2_ref, vb)
    neg = branch(x3_ref, vb)

    out_ref[:, :P] = anchor + pos + bias  # out_p (row-packed)
    out_ref[:, P:] = anchor + neg + bias  # out_n (row-packed)


def siamese_forward(x1, x2, x3, params, *, block_rows_packed=2048):
    """x1/x2/x3: (B, S, in_channels). Returns (out_p, out_n), each (B, S, 1) f32."""
    B, S, C = x1.shape
    M = B * S
    f32 = jnp.float32
    hi = jax.lax.Precision.HIGHEST

    w1 = params["w1"].astype(f32)          # (C, n1)
    b1 = params["b1"].astype(f32)          # (n1,)
    w2 = params["w2"].astype(f32)          # (n1, n2)
    b2 = params["b2"].astype(f32)          # (n2,)
    w3 = params["w3"].astype(f32)          # (2*n2, 1)
    b3 = params["b3"].astype(f32)          # (1,)
    n1, n2 = w1.shape[1], w2.shape[1]

    # ---- Fold fc2 through fc1's second linear (exact; tiny one-time preproc).
    w3_top, w3_bot = w3[:n2, :], w3[n2:, :]
    v_top = jnp.dot(w2, w3_top, precision=hi)                # (n1, 1)
    v_bot = jnp.dot(w2, w3_bot, precision=hi)                # (n1, 1)
    bias = (jnp.dot(b2, w3_top, precision=hi)
            + jnp.dot(b2, w3_bot, precision=hi) + b3).reshape(1)

    # ---- Lane-dense row packing: fold P rows into each 128-wide kernel row.
    P = 128 // C if (C <= 128 and 128 % C == 0) else 1
    eye = jnp.eye(P, dtype=f32)
    w1_big = jnp.kron(eye, w1)                               # (P*C, P*n1)
    b1_big = jnp.tile(b1, P).reshape(1, P * n1)              # (1, P*n1)
    vt_big = jnp.kron(eye, v_top)                            # (P*n1, P)
    vb_big = jnp.kron(eye, v_bot)                            # (P*n1, P)

    Mp = pl.cdiv(M, P)
    Mpad = Mp * P

    def pack(x):                       # keep native dtype; cast happens in-kernel
        x = x.reshape(M, C)
        if Mpad != M:
            x = jnp.pad(x, ((0, Mpad - M), (0, 0)))
        return x.reshape(Mp, P * C)

    x1p, x2p, x3p = pack(x1), pack(x2), pack(x3)

    # ---- Tile selection: amortize per-step fixed cost; >=2 steps for the v7x
    #      megacore when there is enough work; sublane-friendly multiple of 16.
    if Mp <= 64:
        tm = Mp                                              # single-step grid
    else:
        nsteps = max(2, pl.cdiv(Mp, block_rows_packed))
        tm = min(Mp, ((pl.cdiv(Mp, nsteps) + 15) // 16) * 16)
    grid = (pl.cdiv(Mp, tm),)

    row_spec = pl.BlockSpec((tm, P * C), lambda i: (i, 0))
    resident = lambda shape: pl.BlockSpec(shape, lambda i: (0, 0))

    in_bytes = 3 * Mpad * C * x1.dtype.itemsize
    wt_bytes = 4 * (P * C * P * n1 + P * n1 + 2 * P * n1 * P + 1)
    out_bytes = 4 * Mp * 2 * P
    flops = 3 * 2 * Mp * ((P * C) * (P * n1) + (P * n1) * P)

    out = pl.pallas_call(
        _siamese_kernel,
        out_shape=jax.ShapeDtypeStruct((Mp, 2 * P), f32),
        grid=grid,
        in_specs=[
            row_spec, row_spec, row_spec,
            resident((P * C, P * n1)),
            resident((1, P * n1)),
            resident((P * n1, P)),
            resident((P * n1, P)),
            pl.BlockSpec(memory_space=pltpu.MemorySpace.SMEM),
        ],
        out_specs=pl.BlockSpec((tm, 2 * P), lambda i: (i, 0)),
        compiler_params=pltpu.CompilerParams(
            dimension_semantics=("parallel",),
            vmem_limit_bytes=32 * 1024 * 1024),
        cost_estimate=pl.CostEstimate(
            flops=flops, transcendentals=0,
            bytes_accessed=in_bytes + wt_bytes + out_bytes),
    )(x1p, x2p, x3p, w1_big, b1_big, vt_big, vb_big, bias)

    out_p = out[:, :P].reshape(Mpad)[:M].reshape(B, S, 1)
    out_n = out[:, P:].reshape(Mpad)[:M].reshape(B, S, 1)
    return out_p, out_n


def init_params(key, in_channels, n1, n2):
    """Deterministic synthetic parameters (shapes match the nn.Module __init__)."""
    ks = jax.random.split(key, 6)

    def u(k, shape, fan_in):
        bound = 1.0 / jnp.sqrt(fan_in)
        return jax.random.uniform(k, shape, jnp.float32, -bound, bound)

    return {
        "w1": u(ks[0], (in_channels, n1), in_channels),
        "b1": u(ks[1], (n1,), in_channels),
        "w2": u(ks[2], (n1, n2), n1),
        "b2": u(ks[3], (n2,), n1),
        "w3": u(ks[4], (2 * n2, 1), 2 * n2),
        "b3": u(ks[5], (1,), 2 * n2),
    }


def _reference(x1, x2, x3, params):
    """Pure-JAX reference mirroring the PyTorch forward (unfused, f32)."""
    hi = jax.lax.Precision.HIGHEST
    w1, b1 = params["w1"], params["b1"]
    w2, b2 = params["w2"], params["b2"]
    w3, b3 = params["w3"], params["b3"]

    def fc1(x):
        h = jnp.dot(x.astype(jnp.float32), w1, precision=hi) + b1
        h = jnp.where(h > 0, h, 0.01 * h)
        return jnp.dot(h, w2, precision=hi) + b2

    o1, o2, o3 = fc1(x1), fc1(x2), fc1(x3)
    out_p = jnp.dot(jnp.concatenate([o1, o2], axis=2), w3, precision=hi) + b3
    out_n = jnp.dot(jnp.concatenate([o1, o3], axis=2), w3, precision=hi) + b3
    return out_p, out_n


if __name__ == "__main__":
    B, S, C = 2, 8, 16       # batch, sequence, in_channels
    N1, N2 = 32, 32          # number_of_neurons_1, number_of_neurons_2

    key = jax.random.PRNGKey(0)
    kp, k1, k2, k3 = jax.random.split(key, 4)
    params = init_params(kp, C, N1, N2)

    x1 = jax.random.normal(k1, (B, S, C), jnp.float32)
    x2 = jax.random.normal(k2, (B, S, C), jnp.float32)
    x3 = jax.random.normal(k3, (B, S, C), jnp.float32)

    out_p, out_n = siamese_forward(x1, x2, x3, params)
    jax.block_until_ready((out_p, out_n))

    ref_p, ref_n = _reference(x1, x2, x3, params)
    assert out_p.shape == (B, S, 1) and out_n.shape == (B, S, 1)
    # Tolerance covers FP reassociation from the exact algebraic folding and
    # any MXU pass decomposition of the f32 matmuls.
    assert jnp.allclose(out_p, ref_p, atol=2e-3, rtol=2e-3), \
        float(jnp.max(jnp.abs(out_p - ref_p)))
    assert jnp.allclose(out_n, ref_n, atol=2e-3, rtol=2e-3), \
        float(jnp.max(jnp.abs(out_n - ref_n)))

    print("KERNEL_OK")
</pallas_src>

<mosaic_0001>
module attributes {stable_mosaic.version = 11 : i64} {
  func.func @_siamese_kernel(%arg0: i32, %arg1: memref<2x128xf32, #tpu.memory_space<vmem>>, %arg2: memref<2x128xf32, #tpu.memory_space<vmem>>, %arg3: memref<2x128xf32, #tpu.memory_space<vmem>>, %arg4: memref<128x256xf32, #tpu.memory_space<vmem>>, %arg5: memref<1x256xf32, #tpu.memory_space<vmem>>, %arg6: memref<256x8xf32, #tpu.memory_space<vmem>>, %arg7: memref<256x8xf32, #tpu.memory_space<vmem>>, %arg8: memref<1xf32, #tpu.memory_space<smem>>, %arg9: memref<2x16xf32, #tpu.memory_space<vmem>>) attributes {dimension_semantics = [#tpu.dimension_semantics<parallel>], iteration_bounds = array<i64: 1>, scalar_prefetch = 0 : i64, scratch_operands = 0 : i64, tpu.core_type = #tpu.core_type<tc>, window_params = [{transform_indices = @transform_0, window_bounds = array<i64: 2, 128>}, {transform_indices = @transform_1, window_bounds = array<i64: 2, 128>}, {transform_indices = @transform_2, window_bounds = array<i64: 2, 128>}, {pipeline_mode = #tpu.pipeline_mode<synchronous>, transform_indices = @transform_3, window_bounds = array<i64: 128, 256>}, {pipeline_mode = #tpu.pipeline_mode<synchronous>, transform_indices = @transform_4, window_bounds = array<i64: 1, 256>}, {pipeline_mode = #tpu.pipeline_mode<synchronous>, transform_indices = @transform_5, window_bounds = array<i64: 256, 8>}, {pipeline_mode = #tpu.pipeline_mode<synchronous>, transform_indices = @transform_6, window_bounds = array<i64: 256, 8>}, {transform_indices = @transform_7, window_bounds = array<i64: 1>}, {transform_indices = @transform_8, window_bounds = array<i64: 2, 16>}]} {
    %c0 = arith.constant 0 : index
    %c0_0 = arith.constant 0 : index
    %0 = vector.load %arg4[%c0, %c0_0] : memref<128x256xf32, #tpu.memory_space<vmem>>, vector<128x256xf32>
    %c0_1 = arith.constant 0 : index
    %c0_2 = arith.constant 0 : index
    %1 = vector.load %arg5[%c0_1, %c0_2] : memref<1x256xf32, #tpu.memory_space<vmem>>, vector<1x256xf32>
    %c0_3 = arith.constant 0 : index
    %c0_4 = arith.constant 0 : index
    %2 = vector.load %arg6[%c0_3, %c0_4] : memref<256x8xf32, #tpu.memory_space<vmem>>, vector<256x8xf32>
    %c0_5 = arith.constant 0 : index
    %c0_6 = arith.constant 0 : index
    %3 = vector.load %arg7[%c0_5, %c0_6] : memref<256x8xf32, #tpu.memory_space<vmem>>, vector<256x8xf32>
    %c0_7 = arith.constant 0 : index
    %4 = memref.load %arg8[%c0_7] : memref<1xf32, #tpu.memory_space<smem>>
    %c0_8 = arith.constant 0 : index
    %c0_9 = arith.constant 0 : index
    %5 = vector.load %arg1[%c0_8, %c0_9] : memref<2x128xf32, #tpu.memory_space<vmem>>, vector<2x128xf32>
    %cst = arith.constant dense<0.000000e+00> : vector<2x256xf32>
    %6 = tpu.matmul %5, %0, %cst {dimension_numbers = #tpu.dot_dimension_numbers<[1], [0], [0], [1], [0, 0, 1, 1], [], []>} : vector<2x128xf32>, vector<128x256xf32>, vector<2x256xf32> -> vector<2x256xf32>
    %7 = vector.broadcast %1 : vector<1x256xf32> to vector<2x256xf32>
    %8 = arith.addf %6, %7 : vector<2x256xf32>
    %cst_10 = arith.constant 0.000000e+00 : f32
    %9 = vector.broadcast %cst_10 : f32 to vector<2x256xf32>
    %10 = arith.cmpf ogt, %8, %9 : vector<2x256xf32>
    %cst_11 = arith.constant 0.00999999977 : f32
    %11 = vector.broadcast %cst_11 : f32 to vector<2x256xf32>
    %12 = arith.mulf %11, %8 : vector<2x256xf32>
    %13 = arith.select %10, %8, %12 : vector<2x256xi1>, vector<2x256xf32>
    %cst_12 = arith.constant dense<0.000000e+00> : vector<2x8xf32>
    %14 = tpu.matmul %13, %2, %cst_12 {dimension_numbers = #tpu.dot_dimension_numbers<[1], [0], [0], [1], [0, 0, 1, 1], [], []>} : vector<2x256xf32>, vector<256x8xf32>, vector<2x8xf32> -> vector<2x8xf32>
    %c0_13 = arith.constant 0 : index
    %c0_14 = arith.constant 0 : index
    %15 = vector.load %arg2[%c0_13, %c0_14] : memref<2x128xf32, #tpu.memory_space<vmem>>, vector<2x128xf32>
    %cst_15 = arith.constant dense<0.000000e+00> : vector<2x256xf32>
    %16 = tpu.matmul %15, %0, %cst_15 {dimension_numbers = #tpu.dot_dimension_numbers<[1], [0], [0], [1], [0, 0, 1, 1], [], []>} : vector<2x128xf32>, vector<128x256xf32>, vector<2x256xf32> -> vector<2x256xf32>
    %17 = vector.broadcast %1 : vector<1x256xf32> to vector<2x256xf32>
    %18 = arith.addf %16, %17 : vector<2x256xf32>
    %cst_16 = arith.constant 0.000000e+00 : f32
    %19 = vector.broadcast %cst_16 : f32 to vector<2x256xf32>
    %20 = arith.cmpf ogt, %18, %19 : vector<2x256xf32>
    %cst_17 = arith.constant 0.00999999977 : f32
    %21 = vector.broadcast %cst_17 : f32 to vector<2x256xf32>
    %22 = arith.mulf %21, %18 : vector<2x256xf32>
    %23 = arith.select %20, %18, %22 : vector<2x256xi1>, vector<2x256xf32>
    %cst_18 = arith.constant dense<0.000000e+00> : vector<2x8xf32>
    %24 = tpu.matmul %23, %3, %cst_18 {dimension_numbers = #tpu.dot_dimension_numbers<[1], [0], [0], [1], [0, 0, 1, 1], [], []>} : vector<2x256xf32>, vector<256x8xf32>, vector<2x8xf32> -> vector<2x8xf32>
    %c0_19 = arith.constant 0 : index
    %c0_20 = arith.constant 0 : index
    %25 = vector.load %arg3[%c0_19, %c0_20] : memref<2x128xf32, #tpu.memory_space<vmem>>, vector<2x128xf32>
    %cst_21 = arith.constant dense<0.000000e+00> : vector<2x256xf32>
    %26 = tpu.matmul %25, %0, %cst_21 {dimension_numbers = #tpu.dot_dimension_numbers<[1], [0], [0], [1], [0, 0, 1, 1], [], []>} : vector<2x128xf32>, vector<128x256xf32>, vector<2x256xf32> -> vector<2x256xf32>
    %27 = vector.broadcast %1 : vector<1x256xf32> to vector<2x256xf32>
    %28 = arith.addf %26, %27 : vector<2x256xf32>
    %cst_22 = arith.constant 0.000000e+00 : f32
    %29 = vector.broadcast %cst_22 : f32 to vector<2x256xf32>
    %30 = arith.cmpf ogt, %28, %29 : vector<2x256xf32>
    %cst_23 = arith.constant 0.00999999977 : f32
    %31 = vector.broadcast %cst_23 : f32 to vector<2x256xf32>
    %32 = arith.mulf %31, %28 : vector<2x256xf32>
    %33 = arith.select %30, %28, %32 : vector<2x256xi1>, vector<2x256xf32>
    %cst_24 = arith.constant dense<0.000000e+00> : vector<2x8xf32>
    %34 = tpu.matmul %33, %3, %cst_24 {dimension_numbers = #tpu.dot_dimension_numbers<[1], [0], [0], [1], [0, 0, 1, 1], [], []>} : vector<2x256xf32>, vector<256x8xf32>, vector<2x8xf32> -> vector<2x8xf32>
    %35 = arith.addf %14, %24 : vector<2x8xf32>
    %36 = vector.broadcast %4 : f32 to vector<2x8xf32>
    %37 = arith.addf %35, %36 : vector<2x8xf32>
    %c0_25 = arith.constant 0 : index
    %c0_26 = arith.constant 0 : index
    %38 = vector.load %arg9[%c0_25, %c0_26] : memref<2x16xf32, #tpu.memory_space<vmem>>, vector<2x8xf32>
    tpu.vector_store %arg9[%c0_25, %c0_26], %37 {strides = array<i32>} : memref<2x16xf32, #tpu.memory_space<vmem>>, vector<2x8xf32>,
    %39 = arith.addf %14, %34 : vector<2x8xf32>
    %40 = vector.broadcast %4 : f32 to vector<2x8xf32>
    %41 = arith.addf %39, %40 : vector<2x8xf32>
    %c0_27 = arith.constant 0 : index
    %c8 = arith.constant 8 : index
    %42 = vector.load %arg9[%c0_27, %c8] : memref<2x16xf32, #tpu.memory_space<vmem>>, vector<2x8xf32>
    tpu.vector_store %arg9[%c0_27, %c8], %41 {strides = array<i32>} : memref<2x16xf32, #tpu.memory_space<vmem>>, vector<2x8xf32>,
    return
  }
  func.func @transform_0(%arg0: i32) -> (i32, i32) {
    %c0_i32 = arith.constant 0 : i32
    %c0_i32_0 = arith.constant 0 : i32
    return %arg0, %c0_i32 : i32, i32
  }
  func.func @transform_1(%arg0: i32) -> (i32, i32) {
    %c0_i32 = arith.constant 0 : i32
    %c0_i32_0 = arith.constant 0 : i32
    return %arg0, %c0_i32 : i32, i32
  }
  func.func @transform_2(%arg0: i32) -> (i32, i32) {
    %c0_i32 = arith.constant 0 : i32
    %c0_i32_0 = arith.constant 0 : i32
    return %arg0, %c0_i32 : i32, i32
  }
  func.func @transform_3(%arg0: i32) -> (i32, i32) {
    %c0_i32 = arith.constant 0 : i32
    %c0_i32_0 = arith.constant 0 : i32
    %c0_i32_1 = arith.constant 0 : i32
    return %c0_i32, %c0_i32_0 : i32, i32
  }
  func.func @transform_4(%arg0: i32) -> (i32, i32) {
    %c0_i32 = arith.constant 0 : i32
    %c0_i32_0 = arith.constant 0 : i32
    %c0_i32_1 = arith.constant 0 : i32
    return %c0_i32, %c0_i32_0 : i32, i32
  }
  func.func @transform_5(%arg0: i32) -> (i32, i32) {
    %c0_i32 = arith.constant 0 : i32
    %c0_i32_0 = arith.constant 0 : i32
    %c0_i32_1 = arith.constant 0 : i32
    return %c0_i32, %c0_i32_0 : i32, i32
  }
  func.func @transform_6(%arg0: i32) -> (i32, i32) {
    %c0_i32 = arith.constant 0 : i32
    %c0_i32_0 = arith.constant 0 : i32
    %c0_i32_1 = arith.constant 0 : i32
    return %c0_i32, %c0_i32_0 : i32, i32
  }
  func.func @transform_7(%arg0: i32) -> i32 {
    %c0_i32 = arith.constant 0 : i32
    %c0_i32_0 = arith.constant 0 : i32
    return %c0_i32 : i32
  }
  func.func @transform_8(%arg0: i32) -> (i32, i32) {
    %c0_i32 = arith.constant 0 : i32
    %c0_i32_0 = arith.constant 0 : i32
    return %arg0, %c0_i32 : i32, i32
  }
}

</mosaic_0001>

<bundles_post_ra>
// kernel: tpu_custom_call.1
= control target key start
LH: loop header
LB: loop body
LE: loop exit
PB: predicated region body
PF: predicated region fallthrough
CT: control target
= control target key end

     0   :  { %s1047_s0 = inlined_call_operand.vmem [shape: f32[2,128], index: 0, kind: input, shape index: {}]   ;;  %s1048_s1 = inlined_call_operand.vmem [shape: f32[2,128], index: 1, kind: input, shape index: {}]   ;;  %s1049_s2 = inlined_call_operand.vmem [shape: f32[2,128], index: 2, kind: input, shape index: {}]   ;;  %s1050_s3 = inlined_call_operand.vmem [shape: f32[128,256], index: 3, kind: input, shape index: {}]   ;;  %s1051_s4 = inlined_call_operand.vmem [shape: f32[1,256], index: 4, kind: input, shape index: {}]   ;;  %s1052_s5 = inlined_call_operand.vmem [shape: f32[256,8], index: 5, kind: input, shape index: {}]   ;;  %s1053_s6 = inlined_call_operand.vmem [shape: f32[256,8], index: 6, kind: input, shape index: {}]   ;;  %s1054_s7 = inlined_call_operand.<no memory space> [shape: f32[1], index: 7, kind: input, shape index: {}]   ;;  %s1055_s8 = inlined_call_operand.hbm [shape: f32[2,16], index: 8, kind: output, shape index: {}]  }
   0x1   :  { %v502_v0 = vld [vmem:[%s1050_s3 + $0xf0] sm:$0xff]  ;;  %v507_v1 = vld [vmem:[%s1050_s3 + $0xf8] sm:$0xff]  ;;  %v512_v2 = vld [vmem:[%s1050_s3 + $0xe0] sm:$0xff] }
   0x2   :  { %135 = vmatpush.msra.mxu0 %v502_v0  ;;  %155 = vmatpush.msra.mxu1 %v507_v1  ;;  %v519_v3 = vld [vmem:[%s1050_s3 + $0xe8] sm:$0xff]  ;;  %v524_v4 = vld [vmem:[%s1050_s3 + $0xd0] sm:$0xff]  ;;  %v529_v5 = vld [vmem:[%s1050_s3 + $0xd8] sm:$0xff] }
   0x3   :  { %v536_v6 = vld [vmem:[%s1050_s3 + $0xc0] sm:$0xff]  ;;  %v541_v7 = vld [vmem:[%s1050_s3 + $0xc8] sm:$0xff]  ;;  %v548_v8 = vld [vmem:[%s1050_s3 + $0xb0] sm:$0xff] }
   0x4   :  { %136 = vmatpush.msra.mxu0 %v512_v2  ;;  %156 = vmatpush.msra.mxu1 %v519_v3  ;;  %v553_v9 = vld [vmem:[%s1050_s3 + $0xb8] sm:$0xff]  ;;  %v560_v10 = vld [vmem:[%s1050_s3 + $0xa0] sm:$0xff]  ;;  %v565_v11 = vld [vmem:[%s1050_s3 + $0xa8] sm:$0xff] }
   0x5   :  { %v572_v12 = vld [vmem:[%s1050_s3 + $0x90] sm:$0xff]  ;;  %v577_v13 = vld [vmem:[%s1050_s3 + $0x98] sm:$0xff] }
   0x6   :  { %137 = vmatpush.msra.mxu0 %v524_v4  ;;  %157 = vmatpush.msra.mxu1 %v529_v5 }
   0x8   :  { %138 = vmatpush.msra.mxu0 %v536_v6  ;;  %158 = vmatpush.msra.mxu1 %v541_v7 }
   0xa   :  { %139 = vmatpush.msra.mxu0 %v548_v8  ;;  %159 = vmatpush.msra.mxu1 %v553_v9 }
   0xb   :  { %14 = vsyncpa [#allocation4], 0  ;;  %v584_v14 = vld [vmem:[%s1050_s3 + $0x80] sm:$0xff]  ;;  %v589_v15 = vld [vmem:[%s1050_s3 + $0x88] sm:$0xff]  ;;  %vm398_vm6 = vcmask 58368   ;;  %s452_s28 = smov 8  }
   0xc   :  { %140 = vmatpush.msra.mxu0 %v560_v10  ;;  %160 = vmatpush.msra.mxu1 %v565_v11  ;;  %v596_v16 = vld [vmem:[%s1050_s3 + $0x70] sm:$0xff]  ;;  %v601_v17 = vld [vmem:[%s1050_s3 + $0x78] sm:$0xff]  ;;  %v608_v18 = vld [vmem:[%s1050_s3 + $0x60] sm:$0xff]  ;;  %s453_s29 = smov [#allocation3]   ;;  %s415_s10 = sshll.u32 %s1055_s8, 4  ;;  %vm406_vm7 = vcmask 123968   ;;  %s416_s10 = int_to_ptr.hbm [resolvable:$true] %s415_s10 }
   0xd   :  { %v613_v19 = vld [vmem:[%s1050_s3 + $0x68] sm:$0xff]  ;;  %v620_v20 = vld [vmem:[%s1050_s3 + $0x50] sm:$0xff]  ;;  %v625_v21 = vld [vmem:[%s1050_s3 + $0x58] sm:$0xff]  ;;  %s413_s30 = sshll.u32 %s453_s29, 4  ;;  %s414_s30 = int_to_ptr.vmem [resolvable:$true] %s413_s30 }
   0xe   :  { %141 = vmatpush.msra.mxu0 %v572_v12  ;;  %161 = vmatpush.msra.mxu1 %v577_v13  ;;  %v632_v22 = vld [vmem:[%s1050_s3 + $0x40] sm:$0xff]  ;;  %v637_v23 = vld [vmem:[%s1050_s3 + $0x48] sm:$0xff]  ;;  %v644_v24 = vld [vmem:[%s1050_s3 + $0x30] sm:$0xff] }
   0xf   :  { %v649_v25 = vld [vmem:[%s1050_s3 + $0x38] sm:$0xff]  ;;  %v656_v26 = vld [vmem:[%s1050_s3 + $0x20] sm:$0xff]  ;;  %v661_v27 = vld [vmem:[%s1050_s3 + $0x28] sm:$0xff] }
  0x10   :  { %142 = vmatpush.msra.mxu0 %v584_v14  ;;  %162 = vmatpush.msra.mxu1 %v589_v15  ;;  %v668_v28 = vld [vmem:[%s1050_s3 + $0x10] sm:$0xff]  ;;  %v673_v29 = vld [vmem:[%s1050_s3 + $0x18] sm:$0xff]  ;;  %v680_v30 = vld [vmem:[%s1050_s3] sm:$0xff] }
  0x11   :  { %v685_v31 = vld [vmem:[%s1050_s3 + $0x8] sm:$0xff]  ;;  %v129_v32 = vld [vmem:[%s1047_s0] sm:$0x3]  ;;  %v79_v34 = vld [vmem:[%s1052_s5 + $0x78] sm:$0xff] }
  0x12   :  { %143 = vmatpush.msra.mxu0 %v596_v16  ;;  %163 = vmatpush.msra.mxu1 %v601_v17  ;;  %v221_v33 = vld [vmem:[%s1048_s1] sm:$0x3]  ;;  %v95_v35 = vld [vmem:[%s1052_s5 + $0xf8] sm:$0xff]  ;;  %v78_v36 = vld [vmem:[%s1052_s5 + $0x70] sm:$0xff] }
  0x13   :  { %v94_v37 = vld [vmem:[%s1052_s5 + $0xf0] sm:$0xff]  ;;  %181 = vmatpush.msra.mxu2 %v79_v34  ;;  %201 = vmatpush.msra.mxu3 %v95_v35  ;;  %v77_v38 = vld [vmem:[%s1052_s5 + $0x68] sm:$0xff]  ;;  %v76_v40 = vld [vmem:[%s1052_s5 + $0x60] sm:$0xff] }
  0x14   :  { %144 = vmatpush.msra.mxu0 %v608_v18  ;;  %164 = vmatpush.msra.mxu1 %v613_v19  ;;  %v93_v39 = vld [vmem:[%s1052_s5 + $0xe8] sm:$0xff]  ;;  %v92_v41 = vld [vmem:[%s1052_s5 + $0xe0] sm:$0xff]  ;;  %v75_v42 = vld [vmem:[%s1052_s5 + $0x58] sm:$0xff] }
  0x15   :  { %182 = vmatpush.msra.mxu2 %v78_v36  ;;  %202 = vmatpush.msra.mxu3 %v94_v37  ;;  %v91_v43 = vld [vmem:[%s1052_s5 + $0xd8] sm:$0xff]  ;;  %v74_v44 = vld [vmem:[%s1052_s5 + $0x50] sm:$0xff]  ;;  %v73_v46 = vld [vmem:[%s1052_s5 + $0x48] sm:$0xff] }
  0x16   :  { %145 = vmatpush.msra.mxu0 %v620_v20  ;;  %165 = vmatpush.msra.mxu1 %v625_v21  ;;  %v90_v45 = vld [vmem:[%s1052_s5 + $0xd0] sm:$0xff]  ;;  %v89_v47 = vld [vmem:[%s1052_s5 + $0xc8] sm:$0xff]  ;;  %v72_v48 = vld [vmem:[%s1052_s5 + $0x40] sm:$0xff] }
  0x17   :  { %183 = vmatpush.msra.mxu2 %v77_v38  ;;  %203 = vmatpush.msra.mxu3 %v93_v39  ;;  %v88_v49 = vld [vmem:[%s1052_s5 + $0xc0] sm:$0xff]  ;;  %v71_v50 = vld [vmem:[%s1052_s5 + $0x38] sm:$0xff]  ;;  %v70_v52 = vld [vmem:[%s1052_s5 + $0x30] sm:$0xff] }
  0x18   :  { %146 = vmatpush.msra.mxu0 %v632_v22  ;;  %166 = vmatpush.msra.mxu1 %v637_v23  ;;  %v87_v51 = vld [vmem:[%s1052_s5 + $0xb8] sm:$0xff]  ;;  %v86_v53 = vld [vmem:[%s1052_s5 + $0xb0] sm:$0xff]  ;;  %v69_v54 = vld [vmem:[%s1052_s5 + $0x28] sm:$0xff] }
  0x19   :  { %184 = vmatpush.msra.mxu2 %v76_v40  ;;  %204 = vmatpush.msra.mxu3 %v92_v41  ;;  %v85_v55 = vld [vmem:[%s1052_s5 + $0xa8] sm:$0xff]  ;;  %v68_v56 = vld [vmem:[%s1052_s5 + $0x20] sm:$0xff]  ;;  %v67_v58 = vld [vmem:[%s1052_s5 + $0x18] sm:$0xff] }
  0x1a   :  { %147 = vmatpush.msra.mxu0 %v644_v24  ;;  %167 = vmatpush.msra.mxu1 %v649_v25  ;;  %v84_v57 = vld [vmem:[%s1052_s5 + $0xa0] sm:$0xff]  ;;  %v83_v59 = vld [vmem:[%s1052_s5 + $0x98] sm:$0xff]  ;;  %v66_v60 = vld [vmem:[%s1052_s5 + $0x10] sm:$0xff] }
  0x1b   :  { %185 = vmatpush.msra.mxu2 %v75_v42  ;;  %205 = vmatpush.msra.mxu3 %v91_v43  ;;  %v82_v61 = vld [vmem:[%s1052_s5 + $0x90] sm:$0xff]  ;;  %v65_v62 = vld [vmem:[%s1052_s5 + $0x8] sm:$0xff]  ;;  %v96_v40 = vld [vmem:[%s1053_s6] sm:$0xff] }
  0x1c   :  { %148 = vmatpush.msra.mxu0 %v656_v26  ;;  %168 = vmatpush.msra.mxu1 %v661_v27  ;;  %v81_v63 = vld [vmem:[%s1052_s5 + $0x88] sm:$0xff]  ;;  %v112_v41 = vld [vmem:[%s1053_s6 + $0x80] sm:$0xff] }
  0x1d   :  { %186 = vmatpush.msra.mxu2 %v74_v44  ;;  %206 = vmatpush.msra.mxu3 %v90_v45  ;;  %v97_v38 = vld [vmem:[%s1053_s6 + $0x8] sm:$0xff] }
  0x1e   :  { %149 = vmatpush.msra.mxu0 %v668_v28  ;;  %169 = vmatpush.msra.mxu1 %v673_v29  ;;  %v113_v39 = vld [vmem:[%s1053_s6 + $0x88] sm:$0xff] }
  0x1f   :  { %187 = vmatpush.msra.mxu2 %v73_v46  ;;  %207 = vmatpush.msra.mxu3 %v89_v47 }
  0x20   :  { %150 = vmatpush.msra.mxu0 %v680_v30  ;;  %170 = vmatpush.msra.mxu1 %v685_v31 }
  0x21   :  { %151 = vmatmul.f32.vlgmr.msra.gmra.mxu0 %v129_v32  ;;  %171 = vmatmul.f32.vlgmr.msra.gmra.mxu1 %v129_v32  ;;  %v98_v32 = vld [vmem:[%s1053_s6 + $0x10] sm:$0xff] }
  0x22   :  { %222 = vmatpush.msrb.mxu0 %v502_v0  ;;  %242 = vmatpush.msrb.mxu1 %v507_v1 }
  0x23   :  { %188 = vmatpush.msra.mxu2 %v72_v48  ;;  %208 = vmatpush.msra.mxu3 %v88_v49 }
  0x24   :  { %223 = vmatpush.msrb.mxu0 %v512_v2  ;;  %243 = vmatpush.msrb.mxu1 %v519_v3 }
  0x25   :  { %189 = vmatpush.msra.mxu2 %v71_v50  ;;  %209 = vmatpush.msra.mxu3 %v87_v51 }
  0x26   :  { %224 = vmatpush.msrb.mxu0 %v524_v4  ;;  %244 = vmatpush.msrb.mxu1 %v529_v5 }
  0x27   :  { %190 = vmatpush.msra.mxu2 %v70_v52  ;;  %210 = vmatpush.msra.mxu3 %v86_v53 }
  0x28   :  { %225 = vmatpush.msrb.mxu0 %v536_v6  ;;  %245 = vmatpush.msrb.mxu1 %v541_v7 }
  0x29   :  { %191 = vmatpush.msra.mxu2 %v69_v54  ;;  %211 = vmatpush.msra.mxu3 %v85_v55 }
  0x2a   :  { %226 = vmatpush.msrb.mxu0 %v548_v8  ;;  %246 = vmatpush.msrb.mxu1 %v553_v9 }
  0x2b   :  { %192 = vmatpush.msra.mxu2 %v68_v56  ;;  %212 = vmatpush.msra.mxu3 %v84_v57 }
  0x2c   :  { %227 = vmatpush.msrb.mxu0 %v560_v10  ;;  %247 = vmatpush.msrb.mxu1 %v565_v11 }
  0x2d   :  { %193 = vmatpush.msra.mxu2 %v67_v58  ;;  %213 = vmatpush.msra.mxu3 %v83_v59 }
  0x2e   :  { %228 = vmatpush.msrb.mxu0 %v572_v12  ;;  %248 = vmatpush.msrb.mxu1 %v577_v13 }
  0x2f   :  { %194 = vmatpush.msra.mxu2 %v66_v60  ;;  %214 = vmatpush.msra.mxu3 %v82_v61 }
  0x30   :  { %229 = vmatpush.msrb.mxu0 %v584_v14  ;;  %249 = vmatpush.msrb.mxu1 %v589_v15 }
  0x31   :  { %195 = vmatpush.msra.mxu2 %v65_v62  ;;  %215 = vmatpush.msra.mxu3 %v81_v63 }
  0x32   :  { %230 = vmatpush.msrb.mxu0 %v596_v16  ;;  %250 = vmatpush.msrb.mxu1 %v601_v17 }
  0x34   :  { %231 = vmatpush.msrb.mxu0 %v608_v18  ;;  %251 = vmatpush.msrb.mxu1 %v613_v19 }
  0x36   :  { %232 = vmatpush.msrb.mxu0 %v620_v20  ;;  %252 = vmatpush.msrb.mxu1 %v625_v21 }
  0x38   :  { %233 = vmatpush.msrb.mxu0 %v632_v22  ;;  %253 = vmatpush.msrb.mxu1 %v637_v23 }
  0x3a   :  { %234 = vmatpush.msrb.mxu0 %v644_v24  ;;  %254 = vmatpush.msrb.mxu1 %v649_v25 }
  0x3c   :  { %235 = vmatpush.msrb.mxu0 %v656_v26  ;;  %255 = vmatpush.msrb.mxu1 %v661_v27 }
  0x3e   :  { %236 = vmatpush.msrb.mxu0 %v668_v28  ;;  %256 = vmatpush.msrb.mxu1 %v673_v29 }
  0x40   :  { %237 = vmatpush.msrb.mxu0 %v680_v30  ;;  %257 = vmatpush.msrb.mxu1 %v685_v31 }
  0x41   :  { %238 = vmatmul.f32.vlgmr.msrb.gmra.mxu0 %v221_v33  ;;  %258 = vmatmul.f32.vlgmr.msrb.gmra.mxu1 %v221_v33  ;;  %v114_v33 = vld [vmem:[%s1053_s6 + $0x90] sm:$0xff] }
  0x42   :  { %309 = vmatpush.msra.mxu0 %v502_v0  ;;  %329 = vmatpush.msra.mxu1 %v507_v1  ;;  %v308_v0 = vld [vmem:[%s1049_s2] sm:$0x3] }
  0x43   :  { %v64_v1 = vld [vmem:[%s1052_s5] sm:$0xff] }
  0x44   :  { %310 = vmatpush.msra.mxu0 %v512_v2  ;;  %330 = vmatpush.msra.mxu1 %v519_v3  ;;  %v80_v2 = vld [vmem:[%s1052_s5 + $0x80] sm:$0xff]  ;;  %v863_v3 = vld [vmem:[%s1053_s6 + $0x78] sm:$0xff] }
  0x45   :  { %196 = vmatpush.msra.mxu2 %v64_v1  ;;  %216 = vmatpush.msra.mxu3 %v80_v2 }
  0x46   :  { %311 = vmatpush.msra.mxu0 %v524_v4  ;;  %331 = vmatpush.msra.mxu1 %v529_v5  ;;  %v868_v4 = vld [vmem:[%s1053_s6 + $0xf8] sm:$0xff]  ;;  %v873_v5 = vld [vmem:[%s1053_s6 + $0x70] sm:$0xff] }
  0x47   :  { %268 = vmatpush.msrb.mxu2 %v863_v3  ;;  %288 = vmatpush.msrb.mxu3 %v868_v4 }
  0x48   :  { %312 = vmatpush.msra.mxu0 %v536_v6  ;;  %332 = vmatpush.msra.mxu1 %v541_v7  ;;  %v878_v6 = vld [vmem:[%s1053_s6 + $0xf0] sm:$0xff]  ;;  %v885_v7 = vld [vmem:[%s1053_s6 + $0x68] sm:$0xff] }
  0x49   :  { %269 = vmatpush.msrb.mxu2 %v873_v5  ;;  %289 = vmatpush.msrb.mxu3 %v878_v6 }
  0x4a   :  { %313 = vmatpush.msra.mxu0 %v548_v8  ;;  %333 = vmatpush.msra.mxu1 %v553_v9  ;;  %v890_v8 = vld [vmem:[%s1053_s6 + $0xe8] sm:$0xff]  ;;  %v897_v9 = vld [vmem:[%s1053_s6 + $0x60] sm:$0xff] }
  0x4b   :  { %270 = vmatpush.msrb.mxu2 %v885_v7  ;;  %290 = vmatpush.msrb.mxu3 %v890_v8 }
  0x4c   :  { %314 = vmatpush.msra.mxu0 %v560_v10  ;;  %334 = vmatpush.msra.mxu1 %v565_v11  ;;  %v902_v10 = vld [vmem:[%s1053_s6 + $0xe0] sm:$0xff]  ;;  %v909_v11 = vld [vmem:[%s1053_s6 + $0x58] sm:$0xff] }
  0x4d   :  { %271 = vmatpush.msrb.mxu2 %v897_v9  ;;  %291 = vmatpush.msrb.mxu3 %v902_v10 }
  0x4e   :  { %315 = vmatpush.msra.mxu0 %v572_v12  ;;  %335 = vmatpush.msra.mxu1 %v577_v13  ;;  %v914_v12 = vld [vmem:[%s1053_s6 + $0xd8] sm:$0xff]  ;;  %v921_v13 = vld [vmem:[%s1053_s6 + $0x50] sm:$0xff] }
  0x4f   :  { %272 = vmatpush.msrb.mxu2 %v909_v11  ;;  %292 = vmatpush.msrb.mxu3 %v914_v12 }
  0x50   :  { %316 = vmatpush.msra.mxu0 %v584_v14  ;;  %336 = vmatpush.msra.mxu1 %v589_v15  ;;  %v926_v14 = vld [vmem:[%s1053_s6 + $0xd0] sm:$0xff]  ;;  %v933_v15 = vld [vmem:[%s1053_s6 + $0x48] sm:$0xff] }
  0x51   :  { %273 = vmatpush.msrb.mxu2 %v921_v13  ;;  %293 = vmatpush.msrb.mxu3 %v926_v14 }
  0x52   :  { %317 = vmatpush.msra.mxu0 %v596_v16  ;;  %337 = vmatpush.msra.mxu1 %v601_v17  ;;  %v938_v16 = vld [vmem:[%s1053_s6 + $0xc8] sm:$0xff]  ;;  %v945_v17 = vld [vmem:[%s1053_s6 + $0x40] sm:$0xff] }
  0x53   :  { %274 = vmatpush.msrb.mxu2 %v933_v15  ;;  %294 = vmatpush.msrb.mxu3 %v938_v16 }
  0x54   :  { %318 = vmatpush.msra.mxu0 %v608_v18  ;;  %338 = vmatpush.msra.mxu1 %v613_v19  ;;  %v950_v18 = vld [vmem:[%s1053_s6 + $0xc0] sm:$0xff]  ;;  %v957_v19 = vld [vmem:[%s1053_s6 + $0x38] sm:$0xff] }
  0x55   :  { %275 = vmatpush.msrb.mxu2 %v945_v17  ;;  %295 = vmatpush.msrb.mxu3 %v950_v18 }
  0x56   :  { %319 = vmatpush.msra.mxu0 %v620_v20  ;;  %339 = vmatpush.msra.mxu1 %v625_v21  ;;  %v962_v20 = vld [vmem:[%s1053_s6 + $0xb8] sm:$0xff]  ;;  %v102_v21 = vld [vmem:[%s1053_s6 + $0x30] sm:$0xff] }
  0x57   :  { %276 = vmatpush.msrb.mxu2 %v957_v19  ;;  %296 = vmatpush.msrb.mxu3 %v962_v20 }
  0x58   :  { %320 = vmatpush.msra.mxu0 %v632_v22  ;;  %340 = vmatpush.msra.mxu1 %v637_v23  ;;  %v118_v22 = vld [vmem:[%s1053_s6 + $0xb0] sm:$0xff]  ;;  %v101_v23 = vld [vmem:[%s1053_s6 + $0x28] sm:$0xff] }
  0x59   :  { %277 = vmatpush.msrb.mxu2 %v102_v21  ;;  %297 = vmatpush.msrb.mxu3 %v118_v22 }
  0x5a   :  { %321 = vmatpush.msra.mxu0 %v644_v24  ;;  %341 = vmatpush.msra.mxu1 %v649_v25  ;;  %v117_v24 = vld [vmem:[%s1053_s6 + $0xa8] sm:$0xff]  ;;  %v100_v25 = vld [vmem:[%s1053_s6 + $0x20] sm:$0xff] }
  0x5b   :  { %278 = vmatpush.msrb.mxu2 %v101_v23  ;;  %298 = vmatpush.msrb.mxu3 %v117_v24 }
  0x5c   :  { %322 = vmatpush.msra.mxu0 %v656_v26  ;;  %342 = vmatpush.msra.mxu1 %v661_v27  ;;  %v116_v26 = vld [vmem:[%s1053_s6 + $0xa0] sm:$0xff]  ;;  %v99_v27 = vld [vmem:[%s1053_s6 + $0x18] sm:$0xff] }
  0x5d   :  { %279 = vmatpush.msrb.mxu2 %v100_v25  ;;  %299 = vmatpush.msrb.mxu3 %v116_v26 }
  0x5e   :  { %323 = vmatpush.msra.mxu0 %v668_v28  ;;  %343 = vmatpush.msra.mxu1 %v673_v29  ;;  %v115_v28 = vld [vmem:[%s1053_s6 + $0x98] sm:$0xff]  ;;  %v63_v29 = vld [vmem:[%s1051_s4] sm:$0x3] }
  0x5f   :  { %280 = vmatpush.msrb.mxu2 %v99_v27  ;;  %300 = vmatpush.msrb.mxu3 %v115_v28 }
  0x60   :  { %324 = vmatpush.msra.mxu0 %v680_v30  ;;  %344 = vmatpush.msra.mxu1 %v685_v31  ;;  %v995_v30 = vperm.slane %v63_v29, 0  ;;  %v997_v31 = vperm.slane %v63_v29, 1 }
  0x61   :  { %325 = vmatmul.f32.vlgmr.msra.gmra.mxu0 %v308_v0  ;;  %345 = vmatmul.f32.vlgmr.msra.gmra.mxu1 %v308_v0 }
  0x62   :  { %281 = vmatpush.msrb.mxu2 %v98_v32  ;;  %301 = vmatpush.msrb.mxu3 %v114_v33 }
  0x64   :  { %282 = vmatpush.msrb.mxu2 %v97_v38  ;;  %302 = vmatpush.msrb.mxu3 %v113_v39 }
  0x66   :  { %283 = vmatpush.msrb.mxu2 %v96_v40  ;;  %303 = vmatpush.msrb.mxu3 %v112_v41 }
  0x9e   :  { %v152_v34 = vpop.f32.mrf.mxu0  ;;  %v172_v35 = vpop.f32.mrf.mxu1 }
  0x9f   :  { %v153_v36 = vadd.f32 %v152_v34, %v995_v30  ;;  %v173_v37 = vadd.f32 %v172_v35, %v997_v31 }
  0xa1   :  { %vm175_vm0 = vcmp.gt.f32.partialorder %v153_v36, 0.0  ;;  %v177_v42 = vmul.f32 0.01, %v153_v36  ;;  %vm176_vm1 = vcmp.gt.f32.partialorder %v173_v37, 0.0  ;;  %v178_v43 = vmul.f32 0.01, %v173_v37 }
  0xa3   :  { %v179_v44 = vsel %vm175_vm0, %v153_v36, %v177_v42  ;;  %v180_v45 = vsel %vm176_vm1, %v173_v37, %v178_v43 }
  0xa4   :  { %197 = vmatmul.f32.vlgmr.msra.gmra.mxu2 %v179_v44  ;;  %217 = vmatmul.f32.vlgmr.msra.gmra.mxu3 %v180_v45 }
  0xa5   :  { %355 = vmatpush.msra.mxu2 %v863_v3  ;;  %375 = vmatpush.msra.mxu3 %v868_v4  ;;  %v396_v4 = vstv %s1054_s7 }
  0xa7   :  { %356 = vmatpush.msra.mxu2 %v873_v5  ;;  %376 = vmatpush.msra.mxu3 %v878_v6 }
  0xa9   :  { %357 = vmatpush.msra.mxu2 %v885_v7  ;;  %377 = vmatpush.msra.mxu3 %v890_v8 }
  0xab   :  { %358 = vmatpush.msra.mxu2 %v897_v9  ;;  %378 = vmatpush.msra.mxu3 %v902_v10 }
  0xad   :  { %359 = vmatpush.msra.mxu2 %v909_v11  ;;  %379 = vmatpush.msra.mxu3 %v914_v12 }
  0xaf   :  { %360 = vmatpush.msra.mxu2 %v921_v13  ;;  %380 = vmatpush.msra.mxu3 %v926_v14 }
  0xb1   :  { %361 = vmatpush.msra.mxu2 %v933_v15  ;;  %381 = vmatpush.msra.mxu3 %v938_v16 }
  0xb3   :  { %362 = vmatpush.msra.mxu2 %v945_v17  ;;  %382 = vmatpush.msra.mxu3 %v950_v18 }
  0xb5   :  { %363 = vmatpush.msra.mxu2 %v957_v19  ;;  %383 = vmatpush.msra.mxu3 %v962_v20 }
  0xb7   :  { %364 = vmatpush.msra.mxu2 %v102_v21  ;;  %384 = vmatpush.msra.mxu3 %v118_v22 }
  0xb9   :  { %365 = vmatpush.msra.mxu2 %v101_v23  ;;  %385 = vmatpush.msra.mxu3 %v117_v24 }
  0xbb   :  { %366 = vmatpush.msra.mxu2 %v100_v25  ;;  %386 = vmatpush.msra.mxu3 %v116_v26 }
  0xbd   :  { %367 = vmatpush.msra.mxu2 %v99_v27  ;;  %387 = vmatpush.msra.mxu3 %v115_v28 }
  0xbe   :  { %v239_v46 = vpop.f32.mrf.mxu0  ;;  %v259_v47 = vpop.f32.mrf.mxu1 }
  0xbf   :  { %v240_v48 = vadd.f32 %v239_v46, %v995_v30  ;;  %v260_v49 = vadd.f32 %v259_v47, %v997_v31  ;;  %368 = vmatpush.msra.mxu2 %v98_v32  ;;  %388 = vmatpush.msra.mxu3 %v114_v33 }
  0xc1   :  { %v264_v50 = vmul.f32 0.01, %v240_v48  ;;  %v265_v51 = vmul.f32 0.01, %v260_v49  ;;  %vm262_vm2 = vcmp.gt.f32.partialorder %v240_v48, 0.0  ;;  %vm263_vm3 = vcmp.gt.f32.partialorder %v260_v49, 0.0  ;;  %369 = vmatpush.msra.mxu2 %v97_v38  ;;  %389 = vmatpush.msra.mxu3 %v113_v39 }
  0xc3   :  { %v266_v52 = vsel %vm262_vm2, %v240_v48, %v264_v50  ;;  %v267_v53 = vsel %vm263_vm3, %v260_v49, %v265_v51  ;;  %370 = vmatpush.msra.mxu2 %v96_v40  ;;  %390 = vmatpush.msra.mxu3 %v112_v41 }
  0xc4   :  { %284 = vmatmul.f32.vlgmr.msrb.gmra.mxu2 %v266_v52  ;;  %304 = vmatmul.f32.vlgmr.msrb.gmra.mxu3 %v267_v53 }
  0xde   :  { %v326_v54 = vpop.f32.mrf.mxu0  ;;  %v346_v55 = vpop.f32.mrf.mxu1 }
  0xdf   :  { %v327_v56 = vadd.f32 %v326_v54, %v995_v30  ;;  %v347_v57 = vadd.f32 %v346_v55, %v997_v31 }
  0xe1   :  { %vm349_vm4 = vcmp.gt.f32.partialorder %v327_v56, 0.0  ;;  %v351_v58 = vmul.f32 0.01, %v327_v56  ;;  %vm350_vm5 = vcmp.gt.f32.partialorder %v347_v57, 0.0  ;;  %v352_v59 = vmul.f32 0.01, %v347_v57 }
  0xe3   :  { %v353_v60 = vsel %vm349_vm4, %v327_v56, %v351_v58  ;;  %v354_v61 = vsel %vm350_vm5, %v347_v57, %v352_v59 }
  0xe4   :  { %371 = vmatmul.f32.vlgmr.msra.gmra.mxu2 %v353_v60  ;;  %391 = vmatmul.f32.vlgmr.msra.gmra.mxu3 %v354_v61 }
 0x127   :  { %v198_v62 = vpop.f32.mrf.mxu2  ;;  %v218_v63 = vpop.f32.mrf.mxu3 }
 0x128   :  { %v219_v2 = vadd.f32 %v218_v63, %v198_v62 }
 0x147   :  { %v285_v0 = vpop.f32.mrf.mxu2  ;;  %v305_v1 = vpop.f32.mrf.mxu3 }
 0x148   :  { %v306_v3 = vadd.f32 %v305_v1, %v285_v0 }
 0x14a   :  { %v395_v5 = vadd.f32 %v306_v3, %v219_v2 }
 0x14c   :  { %v397_v6 = vadd.f32 %v396_v4, %v395_v5 }
 0x14e   :  { %399 = vst.msk [vmem:[#allocation3] sm:$0x3] %vm398_vm6, %v397_v6 }
 0x167   :  { %v372_v7 = vpop.f32.mrf.mxu2  ;;  %v392_v8 = vpop.f32.mrf.mxu3 }
 0x168   :  { %v393_v9 = vadd.f32 %v392_v8, %v372_v7 }
 0x16a   :  { %v400_v10 = vadd.f32 %v393_v9, %v219_v2 }
 0x16c   :  { %v401_v11 = vadd.f32 %v400_v10, %v396_v4 }
 0x16e   :  { %403 = vrot.lane.b32.xlu0 %v401_v11, %s452_s28 }
 0x1e0   :  { %v404_v12 = vpop.permute.xlu0 %403 }
 0x1e1   :  { %407 = vst.msk [vmem:[#allocation3] sm:$0x3] %vm406_vm7, %v404_v12 }
 0x1e2   :  { %418 = dma.vmem_to_hbm [thread:$0]  %s414_s30, 32, %s416_s10, [#allocation4]  }
 0x1e3   :  { %450 = dma.done.wait [#allocation4], 32  }
 0x1e4   :  { %451 = vsyncadd [#allocation4], 4294967264 }
 0x1e5   :  { %423 = vsyncpa [#allocation4], 1 }

</bundles_post_ra>
